<compile_context>
chip_gen: v7x
topology: tpu7x:2x2x1
jax: 0.10.0
libtpu: 0.0.40
codegen_flags: <defaults>
</compile_context>

<pallas_src>
import functools

import jax
import jax.numpy as jnp
import numpy as np
from jax.experimental import pallas as pl
from jax.experimental.pallas import tpu as pltpu


def _round_up(x, m):
    return ((x + m - 1) // m) * m


def _sublane_multiple(dtype):
    itemsize = jnp.dtype(dtype).itemsize
    if itemsize >= 4:
        return 8
    if itemsize == 2:
        return 16
    return 32


def _linear_kernel(x_ref, w_ref, b_ref, o_ref, acc_ref):
    # Grid = (M/tm, N/tn, K/tk); K (axis 2) is the innermost reduction axis.
    k = pl.program_id(2)

    @pl.when(k == 0)
    def _init():
        acc_ref[...] = jnp.zeros_like(acc_ref)

    # MXU matmul with f32 accumulation (works for f32 or bf16 input tiles).
    acc_ref[...] += jnp.dot(
        x_ref[...], w_ref[...], preferred_element_type=jnp.float32
    )

    @pl.when(k == pl.num_programs(2) - 1)
    def _finalize():
        out = acc_ref[...] + b_ref[...].astype(jnp.float32)  # bias added once
        o_ref[...] = out.astype(o_ref.dtype)


@functools.partial(jax.jit, static_argnames=("block_m", "block_n", "block_k"))
def linear_pallas(x, weight, bias=None, *, block_m=256, block_n=512, block_k=512):
    """Computes x @ weight + bias with a tiled Pallas TPU matmul kernel.

    x:      [..., in_dim]  (leading dims flattened to M rows)
    weight: [in_dim, out_dim]
    bias:   [out_dim] or None
    """
    in_dim, out_dim = weight.shape
    lead_shape = x.shape[:-1]
    m = int(np.prod(lead_shape)) if lead_shape else 1
    x2d = x.reshape(m, in_dim)

    if bias is None:
        bias = jnp.zeros((out_dim,), dtype=x.dtype)
    bias2d = bias.reshape(1, out_dim)

    # Tile sizes: clamp the (large) defaults to the padded problem dims so
    # small shapes still compile; keep N/K lane-aligned (128) and M
    # sublane-aligned for the input dtype.
    sub = _sublane_multiple(x.dtype)
    tm = min(block_m, _round_up(m, sub))
    tn = min(block_n, _round_up(out_dim, 128))
    tk = min(block_k, _round_up(in_dim, 128))

    mp = _round_up(m, tm)
    n_p = _round_up(out_dim, tn)
    kp = _round_up(in_dim, tk)

    # Zero padding is mathematically neutral for matmul + bias; skip it when
    # shapes are already aligned to avoid an extra copy.
    x_pad = x2d if (mp == m and kp == in_dim) else jnp.pad(
        x2d, ((0, mp - m), (0, kp - in_dim)))
    w_pad = weight if (kp == in_dim and n_p == out_dim) else jnp.pad(
        weight, ((0, kp - in_dim), (0, n_p - out_dim)))
    b_pad = bias2d if (n_p == out_dim) else jnp.pad(
        bias2d, ((0, 0), (0, n_p - out_dim)))

    grid = (mp // tm, n_p // tn, kp // tk)

    bytes_accessed = (
        x_pad.size * x_pad.dtype.itemsize
        + w_pad.size * w_pad.dtype.itemsize
        + b_pad.size * b_pad.dtype.itemsize
        + mp * n_p * jnp.dtype(x.dtype).itemsize
    )
    cost = pl.CostEstimate(
        flops=2 * mp * n_p * kp, transcendentals=0, bytes_accessed=bytes_accessed
    )

    out_pad = pl.pallas_call(
        _linear_kernel,
        out_shape=jax.ShapeDtypeStruct((mp, n_p), x.dtype),
        grid_spec=pltpu.PrefetchScalarGridSpec(
            num_scalar_prefetch=0,
            grid=grid,
            in_specs=[
                pl.BlockSpec((tm, tk), lambda i, j, k: (i, k)),   # activations
                pl.BlockSpec((tk, tn), lambda i, j, k: (k, j)),   # weight tile
                pl.BlockSpec((1, tn), lambda i, j, k: (0, j)),    # bias row
            ],
            out_specs=pl.BlockSpec((tm, tn), lambda i, j, k: (i, j)),
            scratch_shapes=[pltpu.VMEM((tm, tn), jnp.float32)],   # f32 accumulator
        ),
        compiler_params=pltpu.CompilerParams(
            dimension_semantics=("parallel", "parallel", "arbitrary"),
            vmem_limit_bytes=64 * 1024 * 1024,
        ),
        cost_estimate=cost,
    )(x_pad, w_pad, b_pad)

    out2d = out_pad if (mp == m and n_p == out_dim) else out_pad[:m, :out_dim]
    return out2d.reshape(*lead_shape, out_dim)


def init_linear_params(key, in_dim, out_dim, bias=True, init_factor=2.0,
                       dtype=jnp.float32):
    # Matches the PyTorch module's __init__ semantics:
    #   weight = randn(in_dim, out_dim) * sqrt(init_factor / in_dim)
    #   bias   = zeros(out_dim)
    wkey, _ = jax.random.split(key)
    weight = jax.random.normal(wkey, (in_dim, out_dim), dtype=dtype) * np.sqrt(
        init_factor / in_dim
    )
    b = jnp.zeros((out_dim,), dtype=dtype) if bias else None
    return weight, b


if __name__ == "__main__":
    key = jax.random.PRNGKey(0)
    xkey, pkey, x2key, w2key, b2key = jax.random.split(key, 5)

    # --- Test 1: small, module-consistent shapes (single-tile grid) ---
    batch, seq, in_dim, out_dim = 2, 8, 32, 64
    x = jax.random.normal(xkey, (batch, seq, in_dim), dtype=jnp.float32)
    weight, bias = init_linear_params(pkey, in_dim, out_dim, bias=True,
                                      init_factor=2.0)

    out = linear_pallas(x, weight, bias)
    out = jax.block_until_ready(out)
    ref = x @ weight + bias
    np.testing.assert_allclose(np.asarray(out), np.asarray(ref),
                               rtol=1e-5, atol=1e-5)
    assert out.shape == (batch, seq, out_dim)

    # --- Test 2: unaligned shapes + multi-step 3D grid (exercises padding,
    #     K accumulation, and the bias epilogue) ---
    b2, s2, k2, n2 = 4, 100, 200, 384  # M=400 -> 4 M-tiles, 3 N-tiles, 2 K-tiles
    x2 = jax.random.normal(x2key, (b2, s2, k2), dtype=jnp.float32)
    w2 = jax.random.normal(w2key, (k2, n2), dtype=jnp.float32) * np.sqrt(2.0 / k2)
    bias2 = jax.random.normal(b2key, (n2,), dtype=jnp.float32)

    out2 = linear_pallas(x2, w2, bias2, block_m=128, block_n=128, block_k=128)
    out2 = jax.block_until_ready(out2)
    ref2 = x2 @ w2 + bias2
    np.testing.assert_allclose(np.asarray(out2), np.asarray(ref2),
                               rtol=1e-5, atol=1e-4)
    assert out2.shape == (b2, s2, n2)

    # --- Test 3: bias=None path (module's `bias=False` branch) ---
    out3 = linear_pallas(x, weight, None)
    out3 = jax.block_until_ready(out3)
    np.testing.assert_allclose(np.asarray(out3), np.asarray(x @ weight),
                               rtol=1e-5, atol=1e-5)

    print("KERNEL_OK")
</pallas_src>

<mosaic_0001>
module attributes {stable_mosaic.version = 11 : i64} {
  func.func @_linear_kernel(%arg0: i32, %arg1: i32, %arg2: i32, %arg3: memref<16x128xf32, #tpu.memory_space<vmem>>, %arg4: memref<128x128xf32, #tpu.memory_space<vmem>>, %arg5: memref<1x128xf32, #tpu.memory_space<vmem>>, %arg6: memref<16x128xf32, #tpu.memory_space<vmem>>, %arg7: memref<16x128xf32, #tpu.memory_space<vmem>>) attributes {dimension_semantics = [#tpu.dimension_semantics<parallel>, #tpu.dimension_semantics<parallel>, #tpu.dimension_semantics<arbitrary>], iteration_bounds = array<i64: 1, 1, 1>, scalar_prefetch = 0 : i64, scratch_operands = 1 : i64, tpu.core_type = #tpu.core_type<tc>, window_params = [{transform_indices = @transform_0, window_bounds = array<i64: 16, 128>}, {transform_indices = @transform_1, window_bounds = array<i64: 128, 128>}, {transform_indices = @transform_2, window_bounds = array<i64: 1, 128>}, {transform_indices = @transform_3, window_bounds = array<i64: 16, 128>}]} {
    %c0_i32 = arith.constant 0 : i32
    %0 = arith.cmpi eq, %arg2, %c0_i32 : i32
    %1 = arith.extui %0 : i1 to i32
    %c0_i32_0 = arith.constant 0 : i32
    %2 = arith.cmpi ne, %1, %c0_i32_0 : i32
    scf.if %2 {
      %cst_10 = arith.constant 0.000000e+00 : f32
      %12 = vector.broadcast %cst_10 : f32 to vector<16x128xf32>
      %c0_11 = arith.constant 0 : index
      %c0_12 = arith.constant 0 : index
      %13 = vector.load %arg7[%c0_11, %c0_12] : memref<16x128xf32, #tpu.memory_space<vmem>>, vector<16x128xf32>
      tpu.vector_store %arg7[%c0_11, %c0_12], %12 {strides = array<i32>} : memref<16x128xf32, #tpu.memory_space<vmem>>, vector<16x128xf32>,
    } else {
    }
    %c0 = arith.constant 0 : index
    %c0_1 = arith.constant 0 : index
    %3 = vector.load %arg7[%c0, %c0_1] : memref<16x128xf32, #tpu.memory_space<vmem>>, vector<16x128xf32>
    %c0_2 = arith.constant 0 : index
    %c0_3 = arith.constant 0 : index
    %4 = vector.load %arg3[%c0_2, %c0_3] : memref<16x128xf32, #tpu.memory_space<vmem>>, vector<16x128xf32>
    %c0_4 = arith.constant 0 : index
    %c0_5 = arith.constant 0 : index
    %5 = vector.load %arg4[%c0_4, %c0_5] : memref<128x128xf32, #tpu.memory_space<vmem>>, vector<128x128xf32>
    %cst = arith.constant dense<0.000000e+00> : vector<16x128xf32>
    %6 = tpu.matmul %4, %5, %cst {dimension_numbers = #tpu.dot_dimension_numbers<[1], [0], [0], [1], [0, 0, 1, 1], [], []>} : vector<16x128xf32>, vector<128x128xf32>, vector<16x128xf32> -> vector<16x128xf32>
    %7 = arith.addf %3, %6 : vector<16x128xf32>
    %c0_6 = arith.constant 0 : index
    %c0_7 = arith.constant 0 : index
    %8 = vector.load %arg7[%c0_6, %c0_7] : memref<16x128xf32, #tpu.memory_space<vmem>>, vector<16x128xf32>
    tpu.vector_store %arg7[%c0_6, %c0_7], %7 {strides = array<i32>} : memref<16x128xf32, #tpu.memory_space<vmem>>, vector<16x128xf32>,
    %c0_i32_8 = arith.constant 0 : i32
    %9 = arith.cmpi eq, %arg2, %c0_i32_8 : i32
    %10 = arith.extui %9 : i1 to i32
    %c0_i32_9 = arith.constant 0 : i32
    %11 = arith.cmpi ne, %10, %c0_i32_9 : i32
    scf.if %11 {
      %c0_10 = arith.constant 0 : index
      %c0_11 = arith.constant 0 : index
      %12 = vector.load %arg7[%c0_10, %c0_11] : memref<16x128xf32, #tpu.memory_space<vmem>>, vector<16x128xf32>
      %c0_12 = arith.constant 0 : index
      %c0_13 = arith.constant 0 : index
      %13 = vector.load %arg5[%c0_12, %c0_13] : memref<1x128xf32, #tpu.memory_space<vmem>>, vector<1x128xf32>
      %14 = vector.broadcast %13 : vector<1x128xf32> to vector<16x128xf32>
      %15 = arith.addf %12, %14 : vector<16x128xf32>
      %c0_14 = arith.constant 0 : index
      %c0_15 = arith.constant 0 : index
      %16 = vector.load %arg6[%c0_14, %c0_15] : memref<16x128xf32, #tpu.memory_space<vmem>>, vector<16x128xf32>
      tpu.vector_store %arg6[%c0_14, %c0_15], %15 {strides = array<i32>} : memref<16x128xf32, #tpu.memory_space<vmem>>, vector<16x128xf32>,
    } else {
    }
    return
  }
  func.func @transform_0(%arg0: i32, %arg1: i32, %arg2: i32) -> (i32, i32) {
    %c0_i32 = arith.constant 0 : i32
    return %arg0, %arg2 : i32, i32
  }
  func.func @transform_1(%arg0: i32, %arg1: i32, %arg2: i32) -> (i32, i32) {
    %c0_i32 = arith.constant 0 : i32
    return %arg2, %arg1 : i32, i32
  }
  func.func @transform_2(%arg0: i32, %arg1: i32, %arg2: i32) -> (i32, i32) {
    %c0_i32 = arith.constant 0 : i32
    %c0_i32_0 = arith.constant 0 : i32
    return %c0_i32, %arg1 : i32, i32
  }
  func.func @transform_3(%arg0: i32, %arg1: i32, %arg2: i32) -> (i32, i32) {
    %c0_i32 = arith.constant 0 : i32
    return %arg0, %arg1 : i32, i32
  }
}

</mosaic_0001>

<bundles_post_ra>
// kernel: linear_pallas.1
= control target key start
LH: loop header
LB: loop body
LE: loop exit
PB: predicated region body
PF: predicated region fallthrough
CT: control target
= control target key end

     0   :  { %8 = vsyncpa [#allocation4], 0  ;;  %s469_s0 = inlined_call_operand.hbm [shape: f32[16,128], index: 0, kind: input, shape index: {}]   ;;  %s470_s1 = inlined_call_operand.hbm [shape: f32[128,128], index: 1, kind: input, shape index: {}]   ;;  %s471_s2 = inlined_call_operand.hbm [shape: f32[1,128], index: 2, kind: input, shape index: {}]   ;;  %s472_s3 = inlined_call_operand.hbm [shape: f32[16,128], index: 3, kind: output, shape index: {}]  }
   0x1   :  { %9 = vsyncpa [#allocation7], 0 }
   0x2   :  { %10 = vsyncpa [#allocation5], 0  ;;  %s379_s12 = smov [#allocation6]   ;;  %s380_s14 = smov [#allocation3]  }
   0x3   :  { %s28_s13 = sshll.u32 %s379_s12, 4  ;;  %s16_s15 = sshll.u32 %s380_s14, 4  ;;  %s29_s13 = int_to_ptr.vmem [resolvable:$true] %s28_s13  ;;  %s405_s15 = int_to_ptr.vmem [resolvable:$true] %s16_s15 }
   0x4   :  { %s285_s18 = scalar_lea.hbm %s470_s1, 2048 }
   0x5   :  { %p286_p0 = scmp.ne.s32.totalorder %s470_s1, %s285_s18  ;;  %p289_p1 = scmp.lt.u32.totalorder %s285_s18, %s470_s1 }
   0x7   :  { %p291_p2 = pnand %p289_p1, %p286_p0 }
   0x9   :  { %294 = shalt.err (!%p291_p2)
}
   0xa   :  { %s295_s23 = scalar_lea.vmem %s29_s13, 2048  ;;  %p300_p4 = scmp.lt.s32.totalorder %s29_s13, %s29_s13 }
   0xb   :  { %p296_p3 = scmp.ne.s32.totalorder %s29_s13, %s295_s23  ;;  %p301_p5 = scmp.lt.s32.totalorder %s295_s23, %s295_s23 }
   0xd   :  { %p302_p6 = por %p301_p5, %p300_p4 }
   0xf   :  { %p303_p7 = pnand %p302_p6, %p296_p3 }
  0x11   :  { %306 = shalt.err (!%p303_p7)
}
  0x12   :  { %s381_s24 = smov 128   ;;  %s382_s25 = smov 8  }
  0x13   :  { %34 = dma.hbm_to_vmem [thread:$0]  %s470_s1, 2048, %s29_s13, [#allocation7], %s381_s24, %s381_s24, %s382_s25  }
  0x14   :  { %s307_s30 = scalar_lea.hbm %s469_s0, 256 }
  0x15   :  { %p308_p8 = scmp.ne.s32.totalorder %s469_s0, %s307_s30  ;;  %p311_p9 = scmp.lt.u32.totalorder %s307_s30, %s469_s0 }
  0x17   :  { %p313_p10 = pnand %p311_p9, %p308_p8 }
  0x19   :  { %316 = shalt.err (!%p313_p10)
}
  0x1a   :  { %s317_s8 = scalar_lea.vmem %s405_s15, 256  ;;  %p322_p12 = scmp.lt.s32.totalorder %s405_s15, %s405_s15 }
  0x1b   :  { %p318_p11 = scmp.ne.s32.totalorder %s405_s15, %s317_s8  ;;  %p323_p13 = scmp.lt.s32.totalorder %s317_s8, %s317_s8 }
  0x1d   :  { %p324_p0 = por %p323_p13, %p322_p12 }
  0x1f   :  { %p325_p1 = pnand %p324_p0, %p318_p11 }
  0x21   :  { %328 = shalt.err (!%p325_p1)
}
  0x22   :  { %22 = dma.hbm_to_vmem [thread:$0]  %s469_s0, 256, %s405_s15, [#allocation4], %s381_s24, %s381_s24, %s382_s25  }
  0x23   :  { %s383_s10 = smov [#allocation8]   ;;  %s329_s14 = scalar_lea.hbm %s471_s2, 16 }
  0x24   :  { %s41_s11 = sshll.u32 %s383_s10, 4  ;;  %p330_p2 = scmp.ne.s32.totalorder %s471_s2, %s329_s14  ;;  %s42_s11 = int_to_ptr.vmem [resolvable:$true] %s41_s11 }
  0x25   :  { %p333_p3 = scmp.lt.u32.totalorder %s329_s14, %s471_s2 }
  0x27   :  { %p335_p4 = pnand %p333_p3, %p330_p2 }
  0x29   :  { %338 = shalt.err (!%p335_p4)
}
  0x2a   :  { %s339_s20 = scalar_lea.vmem %s42_s11, 16  ;;  %s343_s0 = scalar_lea.vmem %s42_s11, 32 }
  0x2b   :  { %p340_p5 = scmp.ne.s32.totalorder %s42_s11, %s339_s20  ;;  %p344_p6 = scmp.lt.s32.totalorder %s42_s11, %s42_s11 }
  0x2c   :  { %p345_p7 = scmp.lt.s32.totalorder %s343_s0, %s339_s20 }
  0x2e   :  { %p346_p8 = por %p345_p7, %p344_p6 }
  0x30   :  { %p347_p9 = pnand %p346_p8, %p340_p5 }
  0x32   :  { %350 = shalt.err (!%p347_p9)
}
  0x33   :  { %44 = dma.hbm_to_vmem [thread:$0]  %s471_s2, 16, %s42_s11, [#allocation7]  }
  0x34   :  { %373 = dma.done.wait [#allocation4], 256  }
  0x35   :  { %374 = vsyncadd [#allocation4], 4294967040 }
  0x36   :  { %375 = dma.done.wait [#allocation7], 2064  }
  0x37   :  { %376 = vsyncadd [#allocation7], 4294965232  ;;  %v64_v0 = vld [vmem:[#allocation6] sm:$0xff]  ;;  %v65_v1 = vld [vmem:[#allocation6 + $0x8] sm:$0xff]  ;;  %s384_s2 = smov [#allocation9]  }
  0x38   :  { %v66_v2 = vld [vmem:[#allocation6 + $0x10] sm:$0xff]  ;;  %v247_v3 = vpack.c.bf16 %v65_v1, %v64_v0  ;;  %v67_v4 = vld [vmem:[#allocation6 + $0x18] sm:$0xff]  ;;  %v68_v6 = vld [vmem:[#allocation6 + $0x20] sm:$0xff]  ;;  %s180_s22 = sshll.u32 %s384_s2, 4  ;;  %s181_s22 = int_to_ptr.vmem [resolvable:$true] %s180_s22 }
  0x39   :  { %v251_v5 = vpack.c.bf16 %v67_v4, %v66_v2  ;;  %v69_v7 = vld [vmem:[#allocation6 + $0x28] sm:$0xff]  ;;  %v62_v9 = vld [vmem:[#allocation3] sm:$0xff]  ;;  %v71_v11 = vld [vmem:[#allocation6 + $0x38] sm:$0xff]  ;;  %s351_s23 = scalar_lea.vmem %s181_s22, 256  ;;  %p356_p11 = scmp.lt.s32.totalorder %s181_s22, %s181_s22 }
  0x3a   :  { %248 = vmatprep.subr.bf16.mxu0 %v247_v3  ;;  %v255_v8 = vpack.c.bf16 %v69_v7, %v68_v6  ;;  %v70_v10 = vld [vmem:[#allocation6 + $0x30] sm:$0xff]  ;;  %244 = vmatprep.mubr.f32.mxu0 %v62_v9  ;;  %v72_v13 = vld [vmem:[#allocation6 + $0x40] sm:$0xff]  ;;  %v73_v14 = vld [vmem:[#allocation6 + $0x48] sm:$0xff]  ;;  %p352_p10 = scmp.ne.s32.totalorder %s181_s22, %s351_s23  ;;  %p357_p12 = scmp.lt.s32.totalorder %s351_s23, %s351_s23 }
  0x3b   :  { %250 = vmatpush3.bf16.msra.mxu0 %v247_v3  ;;  %v259_v12 = vpack.c.bf16 %v71_v11, %v70_v10  ;;  %v263_v15 = vpack.c.bf16 %v73_v14, %v72_v13  ;;  %v74_v16 = vld [vmem:[#allocation6 + $0x50] sm:$0xff]  ;;  %v75_v17 = vld [vmem:[#allocation6 + $0x58] sm:$0xff]  ;;  %v76_v19 = vld [vmem:[#allocation6 + $0x60] sm:$0xff] }
  0x3c   :  { %252 = vmatprep.subr.bf16.mxu0 %v251_v5  ;;  %v267_v18 = vpack.c.bf16 %v75_v17, %v74_v16  ;;  %v77_v20 = vld [vmem:[#allocation6 + $0x68] sm:$0xff]  ;;  %v78_v22 = vld [vmem:[#allocation6 + $0x70] sm:$0xff]  ;;  %v79_v23 = vld [vmem:[#allocation6 + $0x78] sm:$0xff]  ;;  %p358_p13 = por %p357_p12, %p356_p11 }
  0x3d   :  { %v271_v21 = vpack.c.bf16 %v77_v20, %v76_v19  ;;  %v275_v24 = vpack.c.bf16 %v79_v23, %v78_v22  ;;  %v63_v25 = vld [vmem:[#allocation3 + $0x8] sm:$0xff]  ;;  %v193_v26 = vld [vmem:[#allocation8] ss:$0 sm:$0xff] }
  0x3e   :  { %p359_p0 = pnand %p358_p13, %p352_p10 }
  0x3f   :  { %254 = vmatpush3.bf16.msra.mxu0 %v251_v5 }
  0x40   :  { %256 = vmatprep.subr.bf16.mxu0 %v255_v8 }
  0x43   :  { %258 = vmatpush3.bf16.msra.mxu0 %v255_v8 }
  0x44   :  { %260 = vmatprep.subr.bf16.mxu0 %v259_v12 }
  0x47   :  { %262 = vmatpush3.bf16.msra.mxu0 %v259_v12 }
  0x48   :  { %264 = vmatprep.subr.bf16.mxu0 %v263_v15 }
  0x4b   :  { %266 = vmatpush3.bf16.msra.mxu0 %v263_v15 }
  0x4c   :  { %268 = vmatprep.subr.bf16.mxu0 %v267_v18 }
  0x4f   :  { %270 = vmatpush3.bf16.msra.mxu0 %v267_v18 }
  0x50   :  { %272 = vmatprep.subr.bf16.mxu0 %v271_v21 }
  0x53   :  { %274 = vmatpush3.bf16.msra.mxu0 %v271_v21 }
  0x54   :  { %276 = vmatprep.subr.bf16.mxu0 %v275_v24 }
  0x57   :  { %278 = vmatpush3.bf16.msra.mxu0 %v275_v24 }
  0x5a   :  { %245 = vmatmul.mubr.f32.vlgmr.msra.gmra.mrb[0].mxu0 %v63_v25 }
 0x12d   :  { %v246_v27 = vpop.f32.mrb[0].mxu0 }
 0x12e   :  { %v172_v28 = vadd.f32 %v246_v27, %v193_v26  ;;  %v146_v29 = vpop.f32.mrb[1].mxu0 }
 0x12f   :  { %v171_v30 = vadd.f32 %v193_v26, %v146_v29 }
 0x130   :  { %174 = vst [vmem:[#allocation9 + $0x8] sm:$0xff] %v172_v28 }
 0x131   :  { %173 = vst [vmem:[#allocation9] sm:$0xff] %v171_v30 }
 0x132   :  { %362 = shalt.err (!%p359_p0)
}
 0x133   :  { %s363_s28 = scalar_lea.hbm %s472_s3, 256 }
 0x134   :  { %p364_p1 = scmp.ne.s32.totalorder %s472_s3, %s363_s28  ;;  %p367_p2 = scmp.lt.u32.totalorder %s363_s28, %s472_s3 }
 0x136   :  { %p369_p3 = pnand %p367_p2, %p364_p1 }
 0x138   :  { %372 = shalt.err (!%p369_p3)
}
 0x139   :  { %186 = dma.vmem_to_hbm [thread:$0]  %s181_s22, 256, %s472_s3, [#allocation5], %s381_s24, %s381_s24, %s382_s25  }
 0x13a   :  { %377 = dma.done.wait [#allocation5], 256  }
 0x13b   :  { %378 = vsyncadd [#allocation5], 4294967040 }
 0x13c   :  { %190 = vsyncpa [#allocation4], 1 }
 0x13d   :  { %191 = vsyncpa [#allocation7], 1 }
 0x13e   :  { %192 = vsyncpa [#allocation5], 1 }

</bundles_post_ra>
